<compile_context>
chip_gen: v7x
topology: tpu7x:2x2x1
jax: 0.10.0
libtpu: 0.0.40
codegen_flags: <defaults>
</compile_context>

<pallas_src>
import functools
import inspect
import math

import jax
import jax.numpy as jnp
from jax.experimental import pallas as pl
from jax.experimental.pallas import tpu as pltpu


def _round_up(n, m):
    return ((n + m - 1) // m) * m


@functools.lru_cache(maxsize=None)
def _single_buffer_weights_supported():
    """One-time capability probe for pl.Buffered(1) on an input BlockSpec.

    A failing probe only disables weight single-buffering; it never masks
    failures of the real kernel (review item: no broad try/except fallback).
    """
    if not hasattr(pl, "Buffered"):
        return False
    if "pipeline_mode" not in inspect.signature(pl.BlockSpec).parameters:
        return False

    def _copy(x_ref, o_ref):
        o_ref[...] = x_ref[...]

    try:
        probe = pl.pallas_call(
            _copy,
            out_shape=jax.ShapeDtypeStruct((8, 128), jnp.float32),
            grid=(1,),
            in_specs=[pl.BlockSpec((8, 128), lambda i: (0, 0),
                                   pipeline_mode=pl.Buffered(1))],
            out_specs=pl.BlockSpec((8, 128), lambda i: (0, 0)),
        )
        jax.block_until_ready(probe(jnp.zeros((8, 128), jnp.float32)))
        return True
    except Exception:  # noqa: BLE001 - capability probe only
        return False


def _choose_h_chunk(E, H, w_itemsize, w_budget_bytes):
    """Largest multiple-of-128 divisor of H whose (W1+W2) chunk fits the budget.

    Returns H (fully resident weights) when they fit or when H cannot be chunked
    cleanly (H not a multiple of 128)."""
    if 2 * E * H * w_itemsize <= w_budget_bytes or H % 128 != 0:
        return H
    best = 128
    for c in range(256, H, 128):
        if H % c == 0 and 2 * E * c * w_itemsize <= w_budget_bytes:
            best = c
    return best


def fused_split_mlp_kernel(seg_ids_ref,                      # scalar prefetch (SMEM)
                           x_ref, lnw_ref, lnb_ref, w1_ref, b1_ref, w2_ref, b2_ref,
                           o_ref,
                           xn_scr, acc_scr):
    """Grid = (tl, B*z tiles, H chunks).  Per (t, i) cell: one (bz_tile, E) slab.

    Weights for timestep t's segment are selected by the index_maps (seg_ids is
    only used there); with a single H chunk they stay resident and are DMA'd once
    per segment for the whole kernel."""
    del seg_ids_ref
    h_idx = pl.program_id(2)

    @pl.when(h_idx == 0)
    def _init():
        # LayerNorm in f32 (biased variance, eps=1e-5, affine).  Cache the
        # normalized rows (compute dtype) for all H chunks, zero the accumulator.
        xf = x_ref[...].astype(jnp.float32)
        mu = jnp.mean(xf, axis=-1, keepdims=True)
        xc = xf - mu
        var = jnp.mean(xc * xc, axis=-1, keepdims=True)
        xn = xc * jax.lax.rsqrt(var + 1e-5)
        xn = xn * lnw_ref[...] + lnb_ref[...]
        xn_scr[...] = xn.astype(xn_scr.dtype)
        acc_scr[...] = jnp.zeros_like(acc_scr)

    # One H chunk: bf16 operands, f32 accumulation on the MXU; ReLU is per hidden
    # unit, so summing chunk contributions is exact.
    h = jnp.dot(xn_scr[...], w1_ref[...], preferred_element_type=jnp.float32)
    h = jnp.maximum(h + b1_ref[...], 0.0)
    acc_scr[...] += jnp.dot(h.astype(w2_ref.dtype), w2_ref[...],
                            preferred_element_type=jnp.float32)

    @pl.when(h_idx == pl.num_programs(2) - 1)
    def _finalize():
        # Residual: re-read the (still resident) input block instead of keeping
        # an f32 copy alive across both matmuls; fold b2 into the same add.
        o_ref[...] = (x_ref[...].astype(jnp.float32)
                      + acc_scr[...] + b2_ref[...]).astype(o_ref.dtype)


def split_call_join(x, seqlens, params_list, *, bz_tile=256,
                    compute_dtype=jnp.bfloat16, h_chunk=None,
                    weight_vmem_budget=24 << 20):
    """SplitCallJoin.forward with one pointwise residual-MLP module per segment,
    fused into a single pallas_call (no per-segment slices / concatenate).

    x: (B, z*tl, E), tl = sum(seqlens); params_list[s] = segment s's
    (ln_w, ln_b, w1, b1, w2, b2); all segments must share (E, H).

    I/O dtype follows x.dtype (pass bf16 x for bf16 I/O in a bf16 model).
    bz_tile: rows of B*z per MXU call; 256 is a good default, 512 has VMEM
    headroom on v6e (128 MiB).  It is capped at B*z and B*z is padded only when
    it does not divide."""
    tl = sum(seqlens)
    S = len(seqlens)
    assert len(params_list) == S
    B, ZT, E = x.shape
    assert ZT % tl == 0, "sequence dim must be a multiple of sum(seqlens)"
    z = ZT // tl
    BZ = B * z
    H = params_list[0][2].shape[1]
    for p in params_list:
        assert p[2].shape == (E, H) and p[4].shape == (H, E), \
            "all segment modules must share (E, H)"

    # Stack per-segment params with a leading S axis; matmul weights cast once.
    lnw = jnp.stack([p[0] for p in params_list]).astype(jnp.float32)      # (S,1,E)
    lnb = jnp.stack([p[1] for p in params_list]).astype(jnp.float32)      # (S,1,E)
    w1 = jnp.stack([p[2] for p in params_list]).astype(compute_dtype)     # (S,E,H)
    b1 = jnp.stack([p[3] for p in params_list]).astype(jnp.float32)       # (S,1,H)
    w2 = jnp.stack([p[4] for p in params_list]).astype(compute_dtype)     # (S,H,E)
    b2 = jnp.stack([p[5] for p in params_list]).astype(jnp.float32)       # (S,1,E)

    # Static per-timestep segment id -> scalar-prefetch table (SMEM).
    seg_ids = jnp.asarray(
        [s for s, l in enumerate(seqlens) for _ in range(l)], jnp.int32)

    # Copy-free (B*z, tl, 1, E) view: the unit axis keeps the x/out block's last
    # two dims equal to the full array dims, so per-timestep blocks satisfy the
    # (8, 128) tiling rule without any transpose/slice in HBM.
    x4 = x.reshape(BZ, tl, 1, E)

    bt = max(1, min(bz_tile, BZ))
    BZp = _round_up(BZ, bt)
    if BZp != BZ:
        x4 = jnp.pad(x4, ((0, BZp - BZ), (0, 0), (0, 0), (0, 0)))

    # H chunking: fully resident weights when they fit the budget, otherwise
    # stream multiple-of-128 chunks (weight re-streaming per (t, i) cell is the
    # price of not fitting VMEM -- crank bz_tile up in that regime).
    w_isz = jnp.dtype(compute_dtype).itemsize
    tH = h_chunk if h_chunk is not None else _choose_h_chunk(
        E, H, w_isz, weight_vmem_budget)
    assert H % tH == 0 and (tH == H or tH % 128 == 0), "bad H chunk"
    n_h = H // tH

    # Single-buffer the big weights only when resident (their block index changes
    # at most at the S-1 segment boundaries); streamed chunks keep double buffers.
    single_buf_w = n_h == 1 and _single_buffer_weights_supported()

    def wspec(shape, imap):
        if single_buf_w:
            return pl.BlockSpec(shape, imap, pipeline_mode=pl.Buffered(1))
        return pl.BlockSpec(shape, imap)

    # Explicit VMEM budget (review item): double-buffered x/out row tiles, the
    # weight chunk(s), small params, scratch and intermediate slack.
    x_isz = jnp.dtype(x.dtype).itemsize
    nbuf_w = 1 if single_buf_w else 2
    est = (2 * 2 * bt * E * x_isz                 # x + out blocks, double buffered
           + nbuf_w * 2 * E * tH * w_isz          # W1 + W2 chunk
           + 2 * 2 * (3 * E + tH) * 4             # ln w/b, b2, b1 chunk (f32)
           + bt * E * (w_isz + 4)                 # xn + acc scratch
           + bt * tH * 4 + 2 * bt * E * 4)        # hidden / LN intermediates
    vmem_limit = max(int(est * 1.5), 32 << 20)
    if vmem_limit > 64 << 20:                     # beyond v7x physical: only ask
        vmem_limit = min(vmem_limit, 112 << 20)   # for more on 128 MiB parts

    grid = (tl, BZp // bt, n_h)

    in_specs = [
        pl.BlockSpec((bt, None, None, E), lambda t, i, h, seg: (i, t, 0, 0)),   # x
        pl.BlockSpec((None, 1, E), lambda t, i, h, seg: (seg[t], 0, 0)),        # ln_w
        pl.BlockSpec((None, 1, E), lambda t, i, h, seg: (seg[t], 0, 0)),        # ln_b
        wspec((None, E, tH), lambda t, i, h, seg: (seg[t], 0, h)),              # W1
        pl.BlockSpec((None, 1, tH), lambda t, i, h, seg: (seg[t], 0, h)),       # b1
        wspec((None, tH, E), lambda t, i, h, seg: (seg[t], h, 0)),              # W2
        pl.BlockSpec((None, 1, E), lambda t, i, h, seg: (seg[t], 0, 0)),        # b2
    ]
    out_spec = pl.BlockSpec((bt, None, None, E), lambda t, i, h, seg: (i, t, 0, 0))

    out = pl.pallas_call(
        fused_split_mlp_kernel,
        out_shape=jax.ShapeDtypeStruct((BZp, tl, 1, E), x.dtype),
        grid_spec=pltpu.PrefetchScalarGridSpec(
            num_scalar_prefetch=1,
            grid=grid,
            in_specs=in_specs,
            out_specs=out_spec,
            scratch_shapes=[pltpu.VMEM((bt, E), compute_dtype),   # LayerNorm(x) cache
                            pltpu.VMEM((bt, E), jnp.float32)],    # H-chunk accumulator
        ),
        compiler_params=pltpu.CompilerParams(
            # timestep and row-tile axes are independent; H chunks accumulate in
            # scratch and must stay sequential.
            # TODO(synk): on v7x, switch the leading axis to pltpu.CORE_PARALLEL
            # if plain "parallel" does not shard the grid across both TensorCores.
            dimension_semantics=("parallel", "parallel", "arbitrary"),
            vmem_limit_bytes=vmem_limit,
        ),
    )(seg_ids, x4, lnw, lnb, w1, b1, w2, b2)

    out = out.reshape(BZp, tl, E)[:BZ]
    return out.reshape(B, ZT, E)


# ----------------------------------------------------------------------------
# Synthetic parameter init + pure-JAX reference (for the correctness check).
# ----------------------------------------------------------------------------
def init_params(key, x_size, mlp_ratio=2, scale=1.0, dtype=jnp.float32):
    """PyTorch nn.Linear weight is (out, in); we store the transpose (in, out) so
    the kernel does row @ W."""
    s = math.sqrt(scale)
    hid = int(x_size * mlp_ratio)
    k1, k2, k3, k4 = jax.random.split(key, 4)
    ln_w = jnp.ones((1, x_size), dtype)
    ln_b = jnp.zeros((1, x_size), dtype)
    w1 = jax.random.normal(k1, (x_size, hid), dtype) * (1.0 / math.sqrt(x_size)) * s
    b1 = jax.random.normal(k2, (1, hid), dtype) * 0.02
    w2 = jax.random.normal(k3, (hid, x_size), dtype) * (1.0 / math.sqrt(hid)) * s
    b2 = jax.random.normal(k4, (1, x_size), dtype) * 0.02
    return ln_w, ln_b, w1, b1, w2, b2


def pointwise_reference(x, ln_w, ln_b, w1, b1, w2, b2, compute_dtype=jnp.bfloat16):
    xf = x.astype(jnp.float32)
    mu = jnp.mean(xf, axis=-1, keepdims=True)
    var = jnp.mean((xf - mu) ** 2, axis=-1, keepdims=True)
    xn = (xf - mu) * jax.lax.rsqrt(var + 1e-5) * ln_w[0] + ln_b[0]
    h = jnp.dot(xn.astype(compute_dtype), w1.astype(compute_dtype),
                preferred_element_type=jnp.float32) + b1[0]
    h = jnp.maximum(h, 0.0)
    y = jnp.dot(h.astype(compute_dtype), w2.astype(compute_dtype),
                preferred_element_type=jnp.float32) + b2[0]
    return (xf + y).astype(x.dtype)


def split_call_join_reference(x, seqlens, params_list, compute_dtype=jnp.bfloat16):
    tl = sum(seqlens)
    B, ZT, E = x.shape
    z = ZT // tl
    x4 = x.reshape(B, z, tl, E)
    outs, off = [], 0
    for l, params in zip(seqlens, params_list):
        seg = x4[:, :, off:off + l, :].reshape(B, z * l, E)
        seg = pointwise_reference(seg, *params, compute_dtype=compute_dtype)
        outs.append(seg.reshape(B, z, l, E))
        off += l
    return jnp.concatenate(outs, axis=2).reshape(B, ZT, E)


if __name__ == "__main__":
    key = jax.random.PRNGKey(0)
    kx, kp = jax.random.split(key)

    B, z, E = 2, 2, 32            # batch, z (outer seq factor), x_size
    seqlens = [5, 3]              # SplitCallJoin segment lengths (tl = 8)
    tl = sum(seqlens)
    x = jax.random.normal(kx, (B, z * tl, E), jnp.float32)

    seg_keys = jax.random.split(kp, len(seqlens))
    params_list = [init_params(k, x_size=E, mlp_ratio=2, scale=1.0)
                   for k in seg_keys]

    # 1) fused kernel, resident weights (single H chunk), f32 I/O.
    out = jax.block_until_ready(split_call_join(x, seqlens, params_list))
    assert out.shape == x.shape and out.dtype == x.dtype
    ref = split_call_join_reference(x, seqlens, params_list)
    assert jnp.allclose(out, ref, atol=1e-2, rtol=1e-2), "mismatch vs reference"
    ref_f32 = split_call_join_reference(x, seqlens, params_list,
                                        compute_dtype=jnp.float32)
    assert jnp.allclose(out, ref_f32, atol=1e-1, rtol=1e-1), "mismatch vs f32 ref"

    # 2) exercise the H-chunked accumulator path and multiple B*z tiles.
    params_h = [init_params(k, x_size=E, mlp_ratio=8, scale=1.0)   # H = 256
                for k in seg_keys]
    out_h = jax.block_until_ready(
        split_call_join(x, seqlens, params_h, bz_tile=2, h_chunk=128))
    ref_h = split_call_join_reference(x, seqlens, params_h)
    assert jnp.allclose(out_h, ref_h, atol=1e-2, rtol=1e-2), "mismatch (H-chunked)"

    # 3) bf16 I/O path (LN stats / residual still in f32 inside the kernel).
    x_bf = x.astype(jnp.bfloat16)
    out_bf = jax.block_until_ready(split_call_join(x_bf, seqlens, params_list))
    assert out_bf.shape == x.shape and out_bf.dtype == jnp.bfloat16
    assert jnp.allclose(out_bf.astype(jnp.float32), ref, atol=1e-1, rtol=1e-1), \
        "mismatch (bf16 I/O)"

    print("KERNEL_OK")
</pallas_src>

<mosaic_0001>
module attributes {stable_mosaic.version = 11 : i64} {
  func.func @_copy(%arg0: i32, %arg1: memref<8x128xf32, #tpu.memory_space<vmem>>, %arg2: memref<8x128xf32, #tpu.memory_space<vmem>>) attributes {dimension_semantics = [#tpu.dimension_semantics<arbitrary>], iteration_bounds = array<i64: 1>, scalar_prefetch = 0 : i64, scratch_operands = 0 : i64, tpu.core_type = #tpu.core_type<tc>, window_params = [{pipeline_mode = #tpu.pipeline_mode<synchronous>, transform_indices = @transform_0, window_bounds = array<i64: 8, 128>}, {pipeline_mode = #tpu.pipeline_mode<synchronous>, transform_indices = @transform_1, window_bounds = array<i64: 8, 128>}]} {
    %c0 = arith.constant 0 : index
    %c0_0 = arith.constant 0 : index
    %0 = vector.load %arg1[%c0, %c0_0] : memref<8x128xf32, #tpu.memory_space<vmem>>, vector<8x128xf32>
    %c0_1 = arith.constant 0 : index
    %c0_2 = arith.constant 0 : index
    %1 = vector.load %arg2[%c0_1, %c0_2] : memref<8x128xf32, #tpu.memory_space<vmem>>, vector<8x128xf32>
    tpu.vector_store %arg2[%c0_1, %c0_2], %0 {strides = array<i32>} : memref<8x128xf32, #tpu.memory_space<vmem>>, vector<8x128xf32>,
    return
  }
  func.func @transform_0(%arg0: i32) -> (i32, i32) {
    %c0_i32 = arith.constant 0 : i32
    %c0_i32_0 = arith.constant 0 : i32
    %c0_i32_1 = arith.constant 0 : i32
    return %c0_i32, %c0_i32_0 : i32, i32
  }
  func.func @transform_1(%arg0: i32) -> (i32, i32) {
    %c0_i32 = arith.constant 0 : i32
    %c0_i32_0 = arith.constant 0 : i32
    %c0_i32_1 = arith.constant 0 : i32
    return %c0_i32, %c0_i32_0 : i32, i32
  }
}

module attributes {stable_mosaic.version = 11 : i64} {
  func.func @fused_split_mlp_kernel(%arg0: i32, %arg1: i32, %arg2: i32, %arg3: memref<8xi32, #tpu.memory_space<smem>>, %arg4: memref<4x1x1x32xf32, #tpu.memory_space<vmem>>, %arg5: memref<1x1x32xf32, #tpu.memory_space<vmem>>, %arg6: memref<1x1x32xf32, #tpu.memory_space<vmem>>, %arg7: memref<1x32x64xbf16, #tpu.memory_space<vmem>>, %arg8: memref<1x1x64xf32, #tpu.memory_space<vmem>>, %arg9: memref<1x64x32xbf16, #tpu.memory_space<vmem>>, %arg10: memref<1x1x32xf32, #tpu.memory_space<vmem>>, %arg11: memref<4x1x1x32xf32, #tpu.memory_space<vmem>>, %arg12: memref<4x32xbf16, #tpu.memory_space<vmem>>, %arg13: memref<4x32xf32, #tpu.memory_space<vmem>>) attributes {dimension_semantics = [#tpu.dimension_semantics<parallel>, #tpu.dimension_semantics<parallel>, #tpu.dimension_semantics<arbitrary>], iteration_bounds = array<i64: 8, 1, 1>, scalar_prefetch = 1 : i64, scratch_operands = 2 : i64, tpu.core_type = #tpu.core_type<tc>, window_params = [{transform_indices = @transform_0, window_bounds = array<i64: 4, 1, 1, 32>}, {transform_indices = @transform_1, window_bounds = array<i64: 1, 1, 32>}, {transform_indices = @transform_2, window_bounds = array<i64: 1, 1, 32>}, {transform_indices = @transform_3, window_bounds = array<i64: 1, 32, 64>}, {transform_indices = @transform_4, window_bounds = array<i64: 1, 1, 64>}, {transform_indices = @transform_5, window_bounds = array<i64: 1, 64, 32>}, {transform_indices = @transform_6, window_bounds = array<i64: 1, 1, 32>}, {transform_indices = @transform_7, window_bounds = array<i64: 4, 1, 1, 32>}]} {
    %c0_i32 = arith.constant 0 : i32
    %0 = arith.cmpi eq, %arg2, %c0_i32 : i32
    %1 = arith.extui %0 : i1 to i32
    %c0_i32_0 = arith.constant 0 : i32
    %2 = arith.cmpi ne, %1, %c0_i32_0 : i32
    scf.if %2 {
      %c0_19 = arith.constant 0 : index
      %c0_20 = arith.constant 0 : index
      %c0_21 = arith.constant 0 : index
      %c0_22 = arith.constant 0 : index
      %23 = vector.load %arg4[%c0_19, %c0_20, %c0_21, %c0_22] : memref<4x1x1x32xf32, #tpu.memory_space<vmem>>, vector<4x1x1x32xf32>
      %24 = vector.shape_cast %23 : vector<4x1x1x32xf32> to vector<4x32xf32>
      %cst_23 = arith.constant dense<0.000000e+00> : vector<4xf32>
      %25 = vector.multi_reduction <add>, %24, %cst_23 [1] : vector<4x32xf32> to vector<4xf32>
      %26 = vector.shape_cast %25 : vector<4xf32> to vector<4x1xf32>
      %cst_24 = arith.constant 3.200000e+01 : f32
      %27 = vector.broadcast %cst_24 : f32 to vector<4x1xf32>
      %28 = arith.divf %26, %27 : vector<4x1xf32>
      %29 = vector.broadcast %28 : vector<4x1xf32> to vector<4x32xf32>
      %30 = arith.subf %24, %29 : vector<4x32xf32>
      %31 = arith.mulf %30, %30 : vector<4x32xf32>
      %cst_25 = arith.constant dense<0.000000e+00> : vector<4xf32>
      %32 = vector.multi_reduction <add>, %31, %cst_25 [1] : vector<4x32xf32> to vector<4xf32>
      %33 = vector.shape_cast %32 : vector<4xf32> to vector<4x1xf32>
      %cst_26 = arith.constant 3.200000e+01 : f32
      %34 = vector.broadcast %cst_26 : f32 to vector<4x1xf32>
      %35 = arith.divf %33, %34 : vector<4x1xf32>
      %cst_27 = arith.constant 9.99999974E-6 : f32
      %36 = vector.broadcast %cst_27 : f32 to vector<4x1xf32>
      %37 = arith.addf %35, %36 : vector<4x1xf32>
      %38 = math.rsqrt %37 : vector<4x1xf32>
      %39 = vector.broadcast %38 : vector<4x1xf32> to vector<4x32xf32>
      %40 = arith.mulf %30, %39 : vector<4x32xf32>
      %c0_28 = arith.constant 0 : index
      %c0_29 = arith.constant 0 : index
      %c0_30 = arith.constant 0 : index
      %41 = vector.load %arg5[%c0_28, %c0_29, %c0_30] : memref<1x1x32xf32, #tpu.memory_space<vmem>>, vector<1x1x32xf32>
      %42 = vector.shape_cast %41 : vector<1x1x32xf32> to vector<1x32xf32>
      %43 = vector.broadcast %42 : vector<1x32xf32> to vector<4x32xf32>
      %44 = arith.mulf %40, %43 : vector<4x32xf32>
      %c0_31 = arith.constant 0 : index
      %c0_32 = arith.constant 0 : index
      %c0_33 = arith.constant 0 : index
      %45 = vector.load %arg6[%c0_31, %c0_32, %c0_33] : memref<1x1x32xf32, #tpu.memory_space<vmem>>, vector<1x1x32xf32>
      %46 = vector.shape_cast %45 : vector<1x1x32xf32> to vector<1x32xf32>
      %47 = vector.broadcast %46 : vector<1x32xf32> to vector<4x32xf32>
      %48 = arith.addf %44, %47 : vector<4x32xf32>
      %49 = arith.truncf %48 : vector<4x32xf32> to vector<4x32xbf16>
      %c0_34 = arith.constant 0 : index
      %c0_35 = arith.constant 0 : index
      %50 = vector.load %arg12[%c0_34, %c0_35] : memref<4x32xbf16, #tpu.memory_space<vmem>>, vector<4x32xbf16>
      tpu.vector_store %arg12[%c0_34, %c0_35], %49 {strides = array<i32>} : memref<4x32xbf16, #tpu.memory_space<vmem>>, vector<4x32xbf16>,
      %cst_36 = arith.constant 0.000000e+00 : f32
      %51 = vector.broadcast %cst_36 : f32 to vector<4x32xf32>
      %c0_37 = arith.constant 0 : index
      %c0_38 = arith.constant 0 : index
      %52 = vector.load %arg13[%c0_37, %c0_38] : memref<4x32xf32, #tpu.memory_space<vmem>>, vector<4x32xf32>
      tpu.vector_store %arg13[%c0_37, %c0_38], %51 {strides = array<i32>} : memref<4x32xf32, #tpu.memory_space<vmem>>, vector<4x32xf32>,
    } else {
    }
    %c0 = arith.constant 0 : index
    %c0_1 = arith.constant 0 : index
    %3 = vector.load %arg12[%c0, %c0_1] : memref<4x32xbf16, #tpu.memory_space<vmem>>, vector<4x32xbf16>
    %c0_2 = arith.constant 0 : index
    %c0_3 = arith.constant 0 : index
    %c0_4 = arith.constant 0 : index
    %4 = vector.load %arg7[%c0_2, %c0_3, %c0_4] : memref<1x32x64xbf16, #tpu.memory_space<vmem>>, vector<1x32x64xbf16>
    %5 = vector.shape_cast %4 : vector<1x32x64xbf16> to vector<32x64xbf16>
    %cst = arith.constant dense<0.000000e+00> : vector<4x64xf32>
    %6 = tpu.matmul %3, %5, %cst {dimension_numbers = #tpu.dot_dimension_numbers<[1], [0], [0], [1], [0, 0, 1, 1], [], []>} : vector<4x32xbf16>, vector<32x64xbf16>, vector<4x64xf32> -> vector<4x64xf32>
    %c0_5 = arith.constant 0 : index
    %c0_6 = arith.constant 0 : index
    %c0_7 = arith.constant 0 : index
    %7 = vector.load %arg8[%c0_5, %c0_6, %c0_7] : memref<1x1x64xf32, #tpu.memory_space<vmem>>, vector<1x1x64xf32>
    %8 = vector.shape_cast %7 : vector<1x1x64xf32> to vector<1x64xf32>
    %9 = vector.broadcast %8 : vector<1x64xf32> to vector<4x64xf32>
    %10 = arith.addf %6, %9 : vector<4x64xf32>
    %cst_8 = arith.constant 0.000000e+00 : f32
    %11 = vector.broadcast %cst_8 : f32 to vector<4x64xf32>
    %12 = arith.maximumf %10, %11 : vector<4x64xf32>
    %c0_9 = arith.constant 0 : index
    %c0_10 = arith.constant 0 : index
    %13 = vector.load %arg13[%c0_9, %c0_10] : memref<4x32xf32, #tpu.memory_space<vmem>>, vector<4x32xf32>
    %14 = arith.truncf %12 : vector<4x64xf32> to vector<4x64xbf16>
    %c0_11 = arith.constant 0 : index
    %c0_12 = arith.constant 0 : index
    %c0_13 = arith.constant 0 : index
    %15 = vector.load %arg9[%c0_11, %c0_12, %c0_13] : memref<1x64x32xbf16, #tpu.memory_space<vmem>>, vector<1x64x32xbf16>
    %16 = vector.shape_cast %15 : vector<1x64x32xbf16> to vector<64x32xbf16>
    %cst_14 = arith.constant dense<0.000000e+00> : vector<4x32xf32>
    %17 = tpu.matmul %14, %16, %cst_14 {dimension_numbers = #tpu.dot_dimension_numbers<[1], [0], [0], [1], [0, 0, 1, 1], [], []>} : vector<4x64xbf16>, vector<64x32xbf16>, vector<4x32xf32> -> vector<4x32xf32>
    %18 = arith.addf %13, %17 : vector<4x32xf32>
    %c0_15 = arith.constant 0 : index
    %c0_16 = arith.constant 0 : index
    %19 = vector.load %arg13[%c0_15, %c0_16] : memref<4x32xf32, #tpu.memory_space<vmem>>, vector<4x32xf32>
    tpu.vector_store %arg13[%c0_15, %c0_16], %18 {strides = array<i32>} : memref<4x32xf32, #tpu.memory_space<vmem>>, vector<4x32xf32>,
    %c0_i32_17 = arith.constant 0 : i32
    %20 = arith.cmpi eq, %arg2, %c0_i32_17 : i32
    %21 = arith.extui %20 : i1 to i32
    %c0_i32_18 = arith.constant 0 : i32
    %22 = arith.cmpi ne, %21, %c0_i32_18 : i32
    scf.if %22 {
      %c0_19 = arith.constant 0 : index
      %c0_20 = arith.constant 0 : index
      %c0_21 = arith.constant 0 : index
      %c0_22 = arith.constant 0 : index
      %23 = vector.load %arg4[%c0_19, %c0_20, %c0_21, %c0_22] : memref<4x1x1x32xf32, #tpu.memory_space<vmem>>, vector<4x1x1x32xf32>
      %24 = vector.shape_cast %23 : vector<4x1x1x32xf32> to vector<4x32xf32>
      %c0_23 = arith.constant 0 : index
      %c0_24 = arith.constant 0 : index
      %25 = vector.load %arg13[%c0_23, %c0_24] : memref<4x32xf32, #tpu.memory_space<vmem>>, vector<4x32xf32>
      %26 = arith.addf %24, %25 : vector<4x32xf32>
      %c0_25 = arith.constant 0 : index
      %c0_26 = arith.constant 0 : index
      %c0_27 = arith.constant 0 : index
      %27 = vector.load %arg10[%c0_25, %c0_26, %c0_27] : memref<1x1x32xf32, #tpu.memory_space<vmem>>, vector<1x1x32xf32>
      %28 = vector.shape_cast %27 : vector<1x1x32xf32> to vector<1x32xf32>
      %29 = vector.broadcast %28 : vector<1x32xf32> to vector<4x32xf32>
      %30 = arith.addf %26, %29 : vector<4x32xf32>
      %c0_28 = arith.constant 0 : index
      %c0_29 = arith.constant 0 : index
      %c0_30 = arith.constant 0 : index
      %c0_31 = arith.constant 0 : index
      %31 = vector.load %arg11[%c0_28, %c0_29, %c0_30, %c0_31] : memref<4x1x1x32xf32, #tpu.memory_space<vmem>>, vector<4x1x1x32xf32>
      %32 = vector.shape_cast %31 : vector<4x1x1x32xf32> to vector<4x32xf32>
      %33 = vector.shape_cast %30 : vector<4x32xf32> to vector<4x1x1x32xf32>
      tpu.vector_store %arg11[%c0_28, %c0_29, %c0_30, %c0_31], %33 {strides = array<i32>} : memref<4x1x1x32xf32, #tpu.memory_space<vmem>>, vector<4x1x1x32xf32>,
    } else {
    }
    return
  }
  func.func @transform_0(%arg0: i32, %arg1: i32, %arg2: i32, %arg3: memref<8xi32, #tpu.memory_space<smem>>) -> (i32, i32, i32, i32) {
    %c0_i32 = arith.constant 0 : i32
    %c0_i32_0 = arith.constant 0 : i32
    %c0_i32_1 = arith.constant 0 : i32
    return %arg1, %arg0, %c0_i32, %c0_i32_0 : i32, i32, i32, i32
  }
  func.func @transform_1(%arg0: i32, %arg1: i32, %arg2: i32, %arg3: memref<8xi32, #tpu.memory_space<smem>>) -> (i32, i32, i32) {
    %0 = arith.index_cast %arg0 : i32 to index
    %1 = memref.load %arg3[%0] : memref<8xi32, #tpu.memory_space<smem>>
    %c0_i32 = arith.constant 0 : i32
    %c0_i32_0 = arith.constant 0 : i32
    %c0_i32_1 = arith.constant 0 : i32
    return %1, %c0_i32, %c0_i32_0 : i32, i32, i32
  }
  func.func @transform_2(%arg0: i32, %arg1: i32, %arg2: i32, %arg3: memref<8xi32, #tpu.memory_space<smem>>) -> (i32, i32, i32) {
    %0 = arith.index_cast %arg0 : i32 to index
    %1 = memref.load %arg3[%0] : memref<8xi32, #tpu.memory_space<smem>>
    %c0_i32 = arith.constant 0 : i32
    %c0_i32_0 = arith.constant 0 : i32
    %c0_i32_1 = arith.constant 0 : i32
    return %1, %c0_i32, %c0_i32_0 : i32, i32, i32
  }
  func.func @transform_3(%arg0: i32, %arg1: i32, %arg2: i32, %arg3: memref<8xi32, #tpu.memory_space<smem>>) -> (i32, i32, i32) {
    %0 = arith.index_cast %arg0 : i32 to index
    %1 = memref.load %arg3[%0] : memref<8xi32, #tpu.memory_space<smem>>
    %c0_i32 = arith.constant 0 : i32
    %c0_i32_0 = arith.constant 0 : i32
    return %1, %c0_i32, %arg2 : i32, i32, i32
  }
  func.func @transform_4(%arg0: i32, %arg1: i32, %arg2: i32, %arg3: memref<8xi32, #tpu.memory_space<smem>>) -> (i32, i32, i32) {
    %0 = arith.index_cast %arg0 : i32 to index
    %1 = memref.load %arg3[%0] : memref<8xi32, #tpu.memory_space<smem>>
    %c0_i32 = arith.constant 0 : i32
    %c0_i32_0 = arith.constant 0 : i32
    return %1, %c0_i32, %arg2 : i32, i32, i32
  }
  func.func @transform_5(%arg0: i32, %arg1: i32, %arg2: i32, %arg3: memref<8xi32, #tpu.memory_space<smem>>) -> (i32, i32, i32) {
    %0 = arith.index_cast %arg0 : i32 to index
    %1 = memref.load %arg3[%0] : memref<8xi32, #tpu.memory_space<smem>>
    %c0_i32 = arith.constant 0 : i32
    %c0_i32_0 = arith.constant 0 : i32
    return %1, %arg2, %c0_i32 : i32, i32, i32
  }
  func.func @transform_6(%arg0: i32, %arg1: i32, %arg2: i32, %arg3: memref<8xi32, #tpu.memory_space<smem>>) -> (i32, i32, i32) {
    %0 = arith.index_cast %arg0 : i32 to index
    %1 = memref.load %arg3[%0] : memref<8xi32, #tpu.memory_space<smem>>
    %c0_i32 = arith.constant 0 : i32
    %c0_i32_0 = arith.constant 0 : i32
    %c0_i32_1 = arith.constant 0 : i32
    return %1, %c0_i32, %c0_i32_0 : i32, i32, i32
  }
  func.func @transform_7(%arg0: i32, %arg1: i32, %arg2: i32, %arg3: memref<8xi32, #tpu.memory_space<smem>>) -> (i32, i32, i32, i32) {
    %c0_i32 = arith.constant 0 : i32
    %c0_i32_0 = arith.constant 0 : i32
    %c0_i32_1 = arith.constant 0 : i32
    return %arg1, %arg0, %c0_i32, %c0_i32_0 : i32, i32, i32, i32
  }
}

</mosaic_0001>

<bundles_post_ra>
// kernel: tpu_custom_call.1
= control target key start
LH: loop header
LB: loop body
LE: loop exit
PB: predicated region body
PF: predicated region fallthrough
CT: control target
= control target key end

     0   :  { %6 = vsyncpa [#allocation3], 0  ;;  %s124_s0 = inlined_call_operand.hbm [shape: f32[8,128], index: 0, kind: input, shape index: {}]   ;;  %s125_s1 = inlined_call_operand.hbm [shape: f32[8,128], index: 1, kind: output, shape index: {}]  }
   0x1   :  { %7 = vsyncpa [#allocation4], 0  ;;  %s88_s6 = smov [#allocation2]   ;;  %s40_s10 = scalar_lea.hbm %s124_s0, 128 }
   0x2   :  { %s14_s7 = sshll.u32 %s88_s6, 4  ;;  %p41_p0 = scmp.ne.s32.totalorder %s124_s0, %s40_s10  ;;  %s15_s7 = int_to_ptr.vmem [resolvable:$true] %s14_s7 }
   0x3   :  { %p44_p1 = scmp.lt.u32.totalorder %s40_s10, %s124_s0 }
   0x5   :  { %p46_p2 = pnand %p44_p1, %p41_p0 }
   0x7   :  { %49 = shalt.err (!%p46_p2)
}
   0x8   :  { %s50_s15 = scalar_lea.vmem %s15_s7, 128  ;;  %p55_p4 = scmp.lt.s32.totalorder %s15_s7, %s15_s7 }
   0x9   :  { %p51_p3 = scmp.ne.s32.totalorder %s15_s7, %s50_s15  ;;  %p56_p5 = scmp.lt.s32.totalorder %s50_s15, %s50_s15 }
   0xb   :  { %p57_p6 = por %p56_p5, %p55_p4 }
   0xd   :  { %p58_p7 = pnand %p57_p6, %p51_p3 }
   0xf   :  { %61 = shalt.err (!%p58_p7)
}
  0x10   :  { %17 = dma.hbm_to_vmem [thread:$0]  %s124_s0, 128, %s15_s7, [#allocation3]  }
  0x11   :  { %84 = dma.done.wait [#allocation3], 128  }
  0x12   :  { %85 = vsyncadd [#allocation3], 4294967168  ;;  %s89_s18 = smov [#allocation5]   ;;  %v21_v0 = vld [vmem:[#allocation2] sm:$0xff] }
  0x13   :  { %s29_s19 = sshll.u32 %s89_s18, 4  ;;  %22 = vst [vmem:[#allocation5] sm:$0xff] %v21_v0  ;;  %s30_s19 = int_to_ptr.vmem [resolvable:$true] %s29_s19 }
  0x14   :  { %s62_s20 = scalar_lea.vmem %s30_s19, 128  ;;  %p67_p9 = scmp.lt.s32.totalorder %s30_s19, %s30_s19 }
  0x15   :  { %p63_p8 = scmp.ne.s32.totalorder %s30_s19, %s62_s20  ;;  %p68_p10 = scmp.lt.s32.totalorder %s62_s20, %s62_s20 }
  0x17   :  { %p69_p11 = por %p68_p10, %p67_p9 }
  0x19   :  { %p70_p12 = pnand %p69_p11, %p63_p8 }
  0x1b   :  { %73 = shalt.err (!%p70_p12)
}
  0x1c   :  { %s74_s23 = scalar_lea.hbm %s125_s1, 128 }
  0x1d   :  { %p75_p13 = scmp.ne.s32.totalorder %s125_s1, %s74_s23  ;;  %p78_p0 = scmp.lt.u32.totalorder %s74_s23, %s125_s1 }
  0x1f   :  { %p80_p1 = pnand %p78_p0, %p75_p13 }
  0x21   :  { %83 = shalt.err (!%p80_p1)
}
  0x22   :  { %32 = dma.vmem_to_hbm [thread:$0]  %s30_s19, 128, %s125_s1, [#allocation4]  }
  0x23   :  { %86 = dma.done.wait [#allocation4], 128  }
  0x24   :  { %87 = vsyncadd [#allocation4], 4294967168 }
  0x25   :  { %36 = vsyncpa [#allocation3], 1 }
  0x26   :  { %37 = vsyncpa [#allocation4], 1 }

// kernel: tpu_custom_call.1
= control target key start
LH: loop header
LB: loop body
LE: loop exit
PB: predicated region body
PF: predicated region fallthrough
CT: control target
= control target key end

     0   :  { %s1763_s0 = inlined_call_operand.vmem [shape: s32[8], index: 0, kind: input, shape index: {}]   ;;  %s1764_s1 = inlined_call_operand.vmem [shape: f32[4,8,1,32], index: 1, kind: input, shape index: {}]   ;;  %s1765_s2 = inlined_call_operand.vmem [shape: f32[2,1,32], index: 2, kind: input, shape index: {}]   ;;  %s1766_s3 = inlined_call_operand.vmem [shape: f32[2,1,32], index: 3, kind: input, shape index: {}]   ;;  %s1767_s4 = inlined_call_operand.vmem [shape: bf16[2,32,64], index: 4, kind: input, shape index: {}]   ;;  %s1768_s5 = inlined_call_operand.vmem [shape: f32[2,1,64], index: 5, kind: input, shape index: {}]   ;;  %s1769_s6 = inlined_call_operand.vmem [shape: bf16[2,64,32], index: 6, kind: input, shape index: {}]   ;;  %s1770_s7 = inlined_call_operand.vmem [shape: f32[2,1,32], index: 7, kind: input, shape index: {}]   ;;  %s1771_s8 = inlined_call_operand.hbm [shape: f32[4,8,1,32], index: 8, kind: output, shape index: {}]  }
   0x1   :  { %s13_s29 = sshll.u32 %s1763_s0, 4  ;;  %s14_s29 = int_to_ptr.vmem [resolvable:$true] %s13_s29 }
   0x2   :  { %s1367_s30 = scalar_lea.vmem %s14_s29, 16  ;;  %p1372_p1 = scmp.lt.s32.totalorder %s14_s29, %s14_s29 }
   0x3   :  { %p1368_p0 = scmp.ne.s32.totalorder %s14_s29, %s1367_s30  ;;  %p1373_p2 = scmp.lt.s32.totalorder %s1367_s30, %s1367_s30 }
   0x5   :  { %p1374_p3 = por %p1373_p2, %p1372_p1 }
   0x7   :  { %p1375_p4 = pnand %p1374_p3, %p1368_p0 }
   0x9   :  { %1378 = shalt.err (!%p1375_p4)  }
   0xa   :  { %s1461_s9 = smov [#allocation5]  }
   0xb   :  { %16 = dma.vmem_to_smem %s14_s29, 16, %s1461_s9, [#allocation4] }
   0xc   :  { %1431 = dma.done.wait [#allocation4], 16 }
   0xd   :  { %1432 = vsyncadd [#allocation4], 4294967280 }
   0xe   :  { %18 = sfence }
   0xf   :  { %19 = vsyncpa [#allocation8], 0 }
  0x10   :  { %21 = vsyncpa [#allocation8 + $0x1], 0  ;;  %s1518_s10 = smov 0   ;;  %s1520_s11 = smov 0  }
  0x11   :  { %s1522_s0 = smov 0   ;;  %s1524_s12 = smov 0  }
  0x12   :  { %s1526_s13 = smov 0   ;;  %s1528_s14 = smov 0  }
  0x13 LB: > { %s1237_s15 = sadd.s32 4294967295, %s1459_s14   ;;  %s1238_s16 = sadd.s32 4294967294, %s1459_s14   ;;  %s1459_s14 = sphi %s1528_s14, %s27_s14   ;;  %s1455_s13 = sphi %s1526_s13, %s1778_s13   ;;  %s1451_s12 = sphi %s1524_s12, %s1777_s12   ;;  %s1447_s0 = sphi %s1522_s0, %s1776_s0   ;;  %s1443_s11 = sphi %s1520_s11, %s1775_s11   ;;  %s1439_s10 = sphi %s1518_s10, %s1774_s10  }
  0x14   : > { %s46_s17 = sadd.s32 1, %s1455_s13  ;;  %s55_s18 = sadd.s32 1, %s1447_s0 }
  0x15   : > { %p48_p5 = scmp.ge.s32.totalorder %s46_s17, 8  ;;  %p62_p6 = scmp.ne.s32.totalorder %s1447_s0, %s1443_s11 }
  0x16   : > { %p63_p7 = scmp.eq.s32.totalorder %s1459_s14, 0  ;;  %p268_p8 = scmp.eq.s32.totalorder %s1237_s15, 7 }
  0x17   : > { %s1780_s17 = smov (%p48_p5, %s46_s17), 0  ;;  %p273_p11 = scmp.ne.s32.totalorder %s1443_s11, %s1439_s10 }
  0x18   : > { %p64_p9 = por %p63_p7, %p62_p6  ;;  %p1557_p10 = por %p268_p8, %p62_p6 }
  0x19   : > { %s51_s20 = ssub.s32 %s1455_s13, %s1780_s17  ;;  %p274_p13 = scmp.eq.s32.totalorder %s1238_s16, 7 }
  0x1a   : > { %p53_p12 = scmp.eq.s32.totalorder %s51_s20, 0  ;;  %p1240_p1 = scmp.ge.s32.totalorder %s1459_s14, 8 }
  0x1b   : > { %p1568_p0 = por %p274_p13, %p273_p11 }
  0x1c   : > { %s1566_s21 = scalar_select %p53_p12, %s1447_s0, %s55_s18  }
  0x1d   : > { %290 = sbr.rel (%p1240_p1) target bundleno = 43 (0x2b), region = 16 }
  0x24   : > { %293 = sbr.rel (!%p64_p9) target bundleno = 43 (0x2b), region = 20  ;;  %s295_s23 = sand.u32 (%p64_p9), 1, %s1447_s0  }
  0x25   : > { %s301_s26 = scalar_lea.vmem (%p64_p9), %s1764_s1, %s1455_s13  ;;  %s1241_s27 = sshll.u32 (%p64_p9), %s295_s23, 2 }
  0x26   : > { %v317_v0 = vld [vmem:[%s301_s26] sm:$0x1] (%p64_p9)  ;;  %v319_v1 = vld [vmem:[%s301_s26 + $0x8] sm:$0x1] (%p64_p9)  ;;  %v321_v2 = vld [vmem:[%s301_s26 + $0x10] sm:$0x1] (%p64_p9) }
  0x27   : > { %v323_v3 = vld [vmem:[%s301_s26 + $0x18] sm:$0x1] (%p64_p9)  ;;  %s297_s28 = scalar_lea.vmem (%p64_p9), [#allocation6], %s1241_s27 }
  0x28   : > { %318 = vst [vmem:[%s297_s28] sm:$0x1] (%p64_p9), %v317_v0  ;;  %320 = vst [vmem:[%s297_s28 + $0x1] sm:$0x1] (%p64_p9), %v319_v1 }
  0x29   : > { %322 = vst [vmem:[%s297_s28 + $0x2] sm:$0x1] (%p64_p9), %v321_v2  ;;  %324 = vst [vmem:[%s297_s28 + $0x3] sm:$0x1] (%p64_p9), %v323_v3 }
  0x2b PF: > { %p1242_p2 = scmp.ge.s32.totalorder %s1459_s14, 1  ;;  %p409_p3 = scmp.lt.s32.totalorder %s1459_s14, 9 }
  0x2d   : > { %p410_p4 = pnand %p1242_p2, %p409_p3 }
  0x2e   : > { %s416_s29 = sand.u32 (!%p410_p4), 1, %s1443_s11   ;;  %v550_v4 = vlaneseq (!%p410_p4)  ;;  %vm570_vm0 = vcmask (!%p410_p4), 257024   ;;  %v1462_v5 = vmov (!%p410_p4), 1966171168   ;;  %v1463_v7 = vmov (!%p410_p4), 0.0   ;;  %s496_s15 = sld [smem:[#allocation5 + %s1451_s12]] (!%p410_p4) }
  0x2f   : > { %413 = sbr.rel (%p410_p4) target bundleno = 875 (0x36b), region = 78  ;;  %s1583_s30 = sshll.u32 (!%p410_p4), %s416_s29, 2  ;;  %v548_v6 = vunpack.c.l.s4 (!%p410_p4), %v1462_v5  ;;  %829 = vst.msk [vmem:[#allocation3] sm:$0xf] (!%p410_p4), %vm570_vm0, %v1463_v7  ;;  %1276 = vmatprep.subr.bf16.mxu0 (!%p410_p4), %v1463_v7  ;;  %1284 = vmatprep.subr.bf16.mxu1 (!%p410_p4), %v1463_v7  ;;  %vm1464_vm1 = vmmov (!%p410_p4), 0   ;;  %vm810_vm2 = vcmask (!%p410_p4), 1041409  }
  0x30   : > { %v1589_v8 = vshrl.u32 (!%p410_p4), %v550_v4, 7  ;;  %s1592_s9 = scalar_lea.vmem (!%p410_p4), [#allocation6], %s1583_s30  ;;  %1280 = vmatprep.mubr.msk.bf16.mxu0 (!%p410_p4), %vm1464_vm1, %v1463_v7  ;;  %1292 = vmatprep.mubr.msk.bf16.mxu1 (!%p410_p4), %vm1464_vm1, %v1463_v7  ;;  %s514_s24 = sld [smem:[#allocation5 + %s1451_s12]] (!%p410_p4)  ;;  %v1465_v0 = vmov (!%p410_p4), 1983009808   ;;  %vm813_vm3 = vcmask (!%p410_p4), 1042434  }
  0x31   : > { %v537_v9 = vld [vmem:[%s1592_s9] sm:$0x1] (!%p410_p4)  ;;  %v538_v10 = vld [vmem:[%s1592_s9 + $0x1] sm:$0x1] (!%p410_p4)  ;;  %v539_v11 = vld [vmem:[%s1592_s9 + $0x2] sm:$0x1] (!%p410_p4)  ;;  %v549_v12 = vunpack.c.0.s8 (!%p410_p4), %v548_v6  ;;  %v750_v1 = vunpack.c.l.s4 (!%p410_p4), %v1465_v0 }
  0x32   : > { %v540_v13 = vld [vmem:[%s1592_s9 + $0x3] sm:$0x1] (!%p410_p4)  ;;  %v545_v14 = vcombine.low (!%p410_p4), %v537_v9, %v538_v10  ;;  %v579_v22 = vsub.s32 (!%p410_p4), 0, %v1589_v8  ;;  %v583_v23 = vsub.s32 (!%p410_p4), 1, %v1589_v8  ;;  %v587_v24 = vsub.s32 (!%p410_p4), 2, %v1589_v8  ;;  %s506_s27 = sld [smem:[#allocation5 + %s1451_s12]] (!%p410_p4) }
  0x33   : > { %v546_v15 = vcombine.low (!%p410_p4), %v539_v11, %v540_v13  ;;  %v1599_v16 = vsub.s32 (!%p410_p4), %v549_v12, %v1589_v8  ;;  %v591_v25 = vsub.s32 (!%p410_p4), 3, %v1589_v8  ;;  %vm816_vm4 = vcmask (!%p410_p4), 1043459  }
  0x34   : > { %p497_p5 = scmp.lt.s32.totalorder (!%p410_p4), %s496_s15, 1  ;;  %vm827_vm5 = vcmask (!%p410_p4), 254976   ;;  %vm854_vm6 = vcmask (!%p410_p4), 261120   ;;  %vm933_vm7 = vcmask (!%p410_p4), 523264   ;;  %vm1059_vm8 = vcmask (!%p410_p4), 253952  }
  0x35   : > { %v553_v17 = vrot.slane (!%p410_p4), %v545_v14, %v1599_v16  ;;  %v560_v18 = vrot.slane (!%p410_p4), %v546_v15, %v1599_v16 }
  0x36   : > { %s1782_s15 = smov (!%p497_p5, %s496_s15), 1  ;;  %p516_p6 = scmp.lt.s32.totalorder %s514_s24, 1 }
  0x37   : > { %v561_v19 = vcombine.low %v553_v17, %v560_v18  ;;  %s1266_s16 = sshll.u32 %s1782_s15, 4  ;;  %s486_s15 = sld [smem:[#allocation5 + %s1451_s12]] }
  0x38   : > { %s504_s23 = scalar_lea.vmem %s1767_s4, %s1266_s16  ;;  %s1784_s24 = smov (!%p516_p6, %s514_s24), 1 }
  0x39   : > { %v568_v20 = vrot.slane %v561_v19, %v1599_v16  ;;  %v1359_v47 = vld [vmem:[%s504_s23] sm:$0xff]   ;;  %v1360_v48 = vld [vmem:[%s504_s23 + $0x8] sm:$0xff]   ;;  %s1267_s25 = sshll.u32 %s1784_s24, 5  ;;  %s491_s16 = sld [smem:[#allocation5 + %s1451_s12]] }
  0x3a   : > { %1277 = vmatpush3.bf16.msra.mxu0 %v1359_v47  ;;  %s1648_s28 = scalar_lea.vmem %s1769_s6, %s1267_s25  ;;  %p507_p9 = scmp.lt.s32.totalorder %s506_s27, 1 }
  0x3b   : > { %v571_v21 = vsel %vm570_vm0, %v568_v20, 0.0  ;;  %1278 = vmatprep.subr.bf16.mxu0 %v1463_v7  ;;  %v1361_v49 = vld [vmem:[%s1648_s28] sm:$0xff]   ;;  %v1362_v50 = vld [vmem:[%s1648_s28 + $0x8] sm:$0xff]   ;;  %s1263_s25 = sshll.u32 %s1451_s12, 4 }
  0x3c   : > { %572 = vadd.xlane.f32.xlu0 %v571_v21  ;;  %1285 = vmatpush3.bf16.msra.mxu1 %v1361_v49  ;;  %s1790_s27 = smov (!%p507_p9, %s506_s27), 1 }
  0x3d   : > { %1286 = vmatprep.subr.bf16.mxu1 %v1463_v7  ;;  %p487_p7 = scmp.lt.s32.totalorder %s486_s15, 1  ;;  %s512_s18 = scalar_lea.vmem %s1768_s5, %s1790_s27 }
  0x3e   : > { %1279 = vmatpush3.bf16.msra.mxu0 %v1360_v48 }
  0x3f   : > { %p492_p8 = scmp.lt.s32.totalorder %s491_s16, 1  ;;  %s1786_s15 = smov (!%p487_p7, %s486_s15), 1 }
  0x40   : > { %1287 = vmatpush3.bf16.msra.mxu1 %v1362_v50  ;;  %s489_s23 = scalar_lea.vmem %s1765_s2, %s1786_s15 }
  0x41   : > { %1288 = vmatprep.subr.bf16.mxu1 %v1463_v7  ;;  %s1788_s16 = smov (!%p492_p8, %s491_s16), 1  ;;  %v1249_v51 = vld [vmem:[%s489_s23] ss:$0 sm:$0xff] }
  0x42   : > { %s494_s26 = scalar_lea.vmem %s1766_s3, %s1788_s16  ;;  %v677_v55 = vrot.slane %v1249_v51, %v1599_v16 }
  0x43   : > { %v1250_v54 = vld [vmem:[%s494_s26] ss:$0 sm:$0xff]  ;;  %s484_s26 = scalar_lea.vmem [#allocation7], %s1583_s30 }
  0x44   : > { %v715_v57 = vrot.slane %v1250_v54, %v1599_v16  ;;  %v678_v58 = vcombine.high %v677_v55, %v677_v55  ;;  %v685_v60 = vrot.slane %v677_v55, %v1599_v16  ;;  %v1251_v54 = vld [vmem:[%s512_s18] ss:$0 sm:$0xff]  ;;  %s1080_s27 = sshll.u32 %s484_s26, 4  ;;  %s1466_s18 = smov [#allocation7]   ;;  %s1710_s27 = int_to_ptr.vmem [resolvable:$true] %s1080_s27 }
  0x45   : > { %s1379_s30 = scalar_lea.vmem %s1710_s27, 64 }
  0x46   : > { %v716_v59 = vcombine.high %v715_v57, %v715_v57  ;;  %v692_v61 = vrot.slane %v678_v58, %v1599_v16  ;;  %v723_v62 = vrot.slane %v715_v57, %v1599_v16  ;;  %v693_v3 = vcombine.high %v685_v60, %v685_v60  ;;  %p1380_p12 = scmp.ne.s32.totalorder %s1710_s27, %s1379_s30 }
  0x48   : > { %v730_v63 = vrot.slane %v716_v59, %v1599_v16  ;;  %v694_v4 = vcombine.high %v692_v61, %v692_v61  ;;  %p1381_p13 = pnand %p1380_p12, %p1557_p10 }
  0x4a   : > { %v732_v12 = vcombine.high %v730_v63, %v730_v63  ;;  %p1382_p1 = pneg %p1381_p13 }
  0xc9   : > { %v573_v26 = vpop.xlane.xlu0 %572 }
  0xca   : > { %v575_v27 = vmul.f32 0.03125, %v573_v26 }
  0xcc   : > { %v580_v28 = vrot.slane %v575_v27, %v579_v22  ;;  %v584_v29 = vrot.slane %v575_v27, %v583_v23  ;;  %v588_v30 = vrot.slane %v575_v27, %v587_v24  ;;  %v592_v31 = vrot.slane %v575_v27, %v591_v25 }
  0xce   : > { %v1617_v32 = vsub.f32 %v537_v9, %v580_v28  ;;  %v1619_v33 = vsub.f32 %v538_v10, %v584_v29  ;;  %v1621_v34 = vsub.f32 %v539_v11, %v588_v30  ;;  %v1623_v35 = vsub.f32 %v540_v13, %v592_v31 }
  0xcf   : > { %v731_v11 = vcombine.high %v723_v62, %v723_v62  ;;  %v751_v13 = vunpack.c.0.s8 %v750_v1 }
  0xd0   : > { %v601_v36 = vmul.f32 %v1617_v32, %v1617_v32  ;;  %v602_v37 = vmul.f32 %v1619_v33, %v1619_v33  ;;  %v603_v38 = vmul.f32 %v1621_v34, %v1621_v34  ;;  %v604_v39 = vmul.f32 %v1623_v35, %v1623_v35 }
  0xd2   : > { %v609_v40 = vcombine.low %v601_v36, %v602_v37  ;;  %v610_v41 = vcombine.low %v603_v38, %v604_v39 }
  0xd4   : > { %v617_v42 = vrot.slane %v609_v40, %v1599_v16  ;;  %v624_v43 = vrot.slane %v610_v41, %v1599_v16 }
  0xd6   : > { %v625_v44 = vcombine.low %v617_v42, %v624_v43 }
  0xd8   : > { %v632_v45 = vrot.slane %v625_v44, %v1599_v16 }
  0xda   : > { %v634_v46 = vsel %vm570_vm0, %v632_v45, 0.0 }
  0xdb   : > { %635 = vadd.xlane.f32.xlu0 %v634_v46 }
 0x168   : > { %v636_v52 = vpop.xlane.xlu0 %635 }
 0x169   : > { %v637_v53 = vmul.f32 0.03125, %v636_v52  ;;  %v1363_v52 = vld [vmem:[%s1648_s28 + $0x10] sm:$0xff]  }
 0x16a   : > { %1289 = vmatpush3.bf16.msra.mxu1 %v1363_v52 }
 0x16b   : > { %v638_v56 = vadd.f32 1e-05, %v637_v53  ;;  %1290 = vmatprep.subr.bf16.mxu1 %v1463_v7  ;;  %v1364_v53 = vld [vmem:[%s1648_s28 + $0x18] sm:$0xff]   ;;  %s526_s28 = sld [smem:[#allocation5 + %s1451_s12]]  ;;  %v899_v7 = vld [vmem:[#allocation3] sm:$0xf] }
 0x16c   : > { %s1717_s12 = scalar_lea.sflag [#allocation8], %s416_s29 }
 0x16d   : > { %1365 = vrsqrt.f32 %v638_v56 }
 0x16e   : > { %1291 = vmatpush3.bf16.msra.mxu1 %v1364_v53 }
 0x171   : > { %p527_p11 = scmp.lt.s32.totalorder %s526_s28, 1 }
 0x173   : > { %s1792_s28 = smov (!%p527_p11, %s526_s28), 1 }
 0x174   : > { %s529_s24 = scalar_lea.vmem %s1770_s7, %s1792_s28  ;;  %s1383_s28 = sshll.u32 %s1466_s18, 4  ;;  %s1384_s28 = int_to_ptr.vmem [resolvable:$false] %s1383_s28 }
 0x175   : > { %s1385_s20 = scalar_lea.vmem %s1384_s28, 128  ;;  %p1386_p2 = scmp.lt.s32.totalorder %s1710_s27, %s1384_s28 }
 0x176   : > { %p1387_p3 = scmp.lt.s32.totalorder %s1385_s20, %s1379_s30 }
 0x177   : > { %v1366_v2 = vpop.eup %1365 }
 0x178   : > { %v644_v5 = vrot.slane %v1366_v2, %v579_v22  ;;  %v648_v6 = vrot.slane %v1366_v2, %v583_v23  ;;  %v652_v9 = vrot.slane %v1366_v2, %v587_v24  ;;  %v656_v10 = vrot.slane %v1366_v2, %v591_v25  ;;  %p1388_p4 = por %p1387_p3, %p1386_p2 }
 0x179   : > { %v754_v23 = vsub.s32 %v751_v13, %v1589_v8 }
 0x17a   : > { %v661_v14 = vmul.f32 %v644_v5, %v1617_v32  ;;  %v662_v15 = vmul.f32 %v648_v6, %v1619_v33  ;;  %v663_v17 = vmul.f32 %v652_v9, %v1621_v34  ;;  %v664_v18 = vmul.f32 %v656_v10, %v1623_v35  ;;  %v983_v9 = vld [vmem:[%s1592_s9] sm:$0x1]  ;;  %p1389_p5 = pnand %p1388_p4, %p1382_p1 }
 0x17c   : > { %v699_v19 = vmul.f32 %v685_v60, %v661_v14  ;;  %v700_v20 = vmul.f32 %v692_v61, %v662_v15  ;;  %v701_v21 = vmul.f32 %v693_v3, %v663_v17  ;;  %v702_v22 = vmul.f32 %v694_v4, %v664_v18  ;;  %v984_v14 = vld [vmem:[%s1592_s9 + $0x1] sm:$0x1]  ;;  %v985_v15 = vld [vmem:[%s1592_s9 + $0x2] sm:$0x1] }
 0x17e   : > { %v737_v24 = vadd.f32 %v723_v62, %v699_v19  ;;  %v738_v26 = vadd.f32 %v730_v63, %v700_v20  ;;  %v739_v25 = vadd.f32 %v731_v11, %v701_v21  ;;  %v740_v27 = vadd.f32 %v732_v12, %v702_v22  ;;  %v1261_v62 = vld [vmem:[%s529_s24] ss:$0 sm:$0xff]  ;;  %v986_v21 = vld [vmem:[%s1592_s9 + $0x3] sm:$0x1]  ;;  %s1708_s9 = scalar_lea.hbm %s1771_s8, %s1263_s25 }
 0x17f   : > { %v1033_v3 = vrot.slane %v1261_v62, %v1599_v16 }
 0x180   : > { %v741_v28 = vpack.c.bf16 %v737_v24, %v737_v24  ;;  %v742_v29 = vpack.c.bf16 %v738_v26, %v738_v26  ;;  %v743_v30 = vpack.c.bf16 %v739_v25, %v739_v25  ;;  %v744_v31 = vpack.c.bf16 %v740_v27, %v740_v27 }
 0x181   : > { %v1034_v5 = vcombine.high %v1033_v3, %v1033_v3  ;;  %v1041_v6 = vrot.slane %v1033_v3, %v1599_v16 }
 0x182   : > { %v755_v32 = vrot.slane %v741_v28, %v754_v23  ;;  %v762_v33 = vrot.slane %v742_v29, %v754_v23  ;;  %v769_v36 = vrot.slane %v743_v30, %v754_v23  ;;  %v776_v34 = vrot.slane %v744_v31, %v754_v23 }
 0x183   : > { %v1048_v11 = vrot.slane %v1034_v5, %v1599_v16  ;;  %v1049_v20 = vcombine.high %v1041_v6, %v1041_v6 }
 0x184   : > { %v783_v37 = vrot.slane %v755_v32, %v754_v23  ;;  %v790_v35 = vrot.slane %v762_v33, %v754_v23  ;;  %v797_v38 = vrot.slane %v769_v36, %v754_v23  ;;  %v804_v39 = vrot.slane %v776_v34, %v754_v23 }
 0x185   : > { %v1050_v22 = vcombine.high %v1048_v11, %v1048_v11 }
 0x186   : > { %v806_v40 = vunpack.c.l.b16 %v790_v35  ;;  %v807_v41 = vunpack.c.l.b16 %v797_v38  ;;  %v808_v42 = vunpack.c.l.b16 %v804_v39  ;;  %v805_v8 = vunpack.c.l.b16 %v783_v37 }
 0x188   : > { %v809_v43 = vrot.slane %v806_v40, 7  ;;  %v812_v44 = vrot.slane %v807_v41, 6  ;;  %v815_v46 = vrot.slane %v808_v42, 5 }
 0x18a   : > { %v811_v45 = vsel %vm810_vm2, %v809_v43, %v805_v8 }
 0x18b   : > { %v814_v47 = vsel %vm813_vm3, %v812_v44, %v811_v45 }
 0x18c   : > { %v817_v48 = vsel %vm816_vm4, %v815_v46, %v814_v47 }
 0x18d   : > { %v818_v49 = vpack.c.b16 %v817_v48, %v817_v48 }
 0x18f   : > { %v825_v50 = vrot.slane %v818_v49, %v754_v23 }
 0x191   : > { %828 = vst.msk [vmem:[#allocation2] sm:$0x3] %vm827_vm5, %v825_v50 }
 0x198   : > { %v830_v51 = vld [vmem:[#allocation2] sm:$0x3] }
 0x199   : > { %1281 = vmatmul.mubr.msk.bf16.vlgmr.msra.gmra.mrb[0].mxu0 %vm854_vm6, %v830_v51 }
 0x26c   : > { %v892_v55 = vpop.f32.mrb[0].mxu0 }
 0x26d   : > { %v893_v56 = vadd.f32 %v1251_v54, %v892_v55  ;;  %v1282_v57 = vpop.f32.mrb[1].mxu0 }
 0x26e   : > { %v895_v58 = vpop.f32.mrb[2].mxu0 }
 0x26f   : > { %v898_v59 = vmax.f32 %v893_v56, 0.0  ;;  %v1283_v60 = vpop.f32.mrb[3].mxu0 }
 0x271   : > { %v900_v61 = vpack.c.bf16 %v898_v59, %v898_v59 }
 0x273   : > { %1293 = vmatmul.mubr.msk.bf16.vlgmr.msra.gmra.mrb[0].mxu1 %vm933_vm7, %v900_v61 }
 0x346   : > { %v971_v63 = vpop.f32.mrb[0].mxu1 }
 0x347   : > { %v977_v0 = vadd.f32 %v971_v63, %v899_v7  ;;  %v1294_v1 = vpop.f32.mrb[1].mxu1 }
 0x348   : > { %v974_v2 = vpop.f32.mrb[2].mxu1 }
 0x349   : > { %979 = vst.msk [vmem:[#allocation3] sm:$0xf] %vm570_vm0, %v977_v0  ;;  %v1295_v4 = vpop.f32.mrb[3].mxu1 }
 0x350   : > { %v1260_v10 = vld.sshfl [vmem:[#allocation3] sm:$0x33 pattern:$0x75316420] }
 0x351   : > { %v996_v12 = vcombine.high %v1260_v10, %v1260_v10  ;;  %v1003_v13 = vrot.slane %v1260_v10, %v1599_v16 }
 0x353   : > { %v1010_v17 = vrot.slane %v996_v12, %v1599_v16  ;;  %v1011_v18 = vcombine.high %v1003_v13, %v1003_v13  ;;  %v1017_v19 = vadd.f32 %v1003_v13, %v983_v9 }
 0x355   : > { %v1012_v23 = vcombine.high %v1010_v17, %v1010_v17  ;;  %v1018_v24 = vadd.f32 %v1010_v17, %v984_v14  ;;  %v1019_v26 = vadd.f32 %v1011_v18, %v985_v15  ;;  %v1055_v25 = vadd.f32 %v1041_v6, %v1017_v19 }
 0x357   : > { %v1020_v27 = vadd.f32 %v1012_v23, %v986_v21  ;;  %v1056_v28 = vadd.f32 %v1048_v11, %v1018_v24  ;;  %v1057_v29 = vadd.f32 %v1049_v20, %v1019_v26  ;;  %1060 = vst.msk [vmem:[%s484_s26] sm:$0x1] %vm1059_vm8, %v1055_v25 }
 0x359   : > { %v1058_v16 = vadd.f32 %v1050_v22, %v1020_v27  ;;  %1061 = vst.msk [vmem:[%s484_s26 + $0x1] sm:$0x1] %vm1059_vm8, %v1056_v28  ;;  %1062 = vst.msk [vmem:[%s484_s26 + $0x2] sm:$0x1] %vm1059_vm8, %v1057_v29 }
 0x35b   : > { %1063 = vst.msk [vmem:[%s484_s26 + $0x3] sm:$0x1] %vm1059_vm8, %v1058_v16 }
 0x35c   : > { %1392 = shalt.err (!%p1389_p5)
}
 0x35d   : > { %s1393_s29 = scalar_lea.hbm %s1708_s9, 64  ;;  %s1397_s25 = scalar_lea.hbm %s1771_s8, 512 }
 0x35e   : > { %p1394_p6 = scmp.ne.s32.totalorder %s1708_s9, %s1393_s29  ;;  %p1398_p9 = scmp.lt.u32.totalorder %s1708_s9, %s1771_s8 }
 0x35f   : > { %p1399_p11 = scmp.lt.u32.totalorder %s1397_s25, %s1393_s29  ;;  %p1401_p13 = scmp.lt.u32.totalorder %s1393_s29, %s1708_s9 }
 0x360   : > { %p1395_p7 = pnand %p1394_p6, %p1557_p10 }
 0x361   : > { %p1400_p12 = por %p1399_p11, %p1398_p9 }
 0x362   : > { %p1396_p8 = pneg %p1395_p7 }
 0x363   : > { %p1402_p1 = por %p1401_p13, %p1400_p12 }
 0x365   : > { %p1403_p2 = pnand %p1402_p1, %p1396_p8 }
 0x367   : > { %1406 = shalt.err (!%p1403_p2)
}
 0x368   : > { %s1467_s16 = smov 16   ;;  %s1468_s30 = smov 128  }
 0x369   : > { %s1469_s18 = smov 1  }
 0x36a   : > { %1296 = dma.vmem_to_hbm [thread:$0]  (%p1557_p10), %s1710_s27, 64, %s1708_s9, %s1717_s12, %s1467_s16, %s1468_s30, %s1469_s18  }
 0x36b PF: > { %p1302_p3 = scmp.ge.s32.totalorder %s1459_s14, 2  ;;  %s1095_s28 = sand.u32 1, %s1439_s10  }
 0x36c   : > { %s1096_s20 = scalar_lea.sflag [#allocation8], %s1095_s28 }
 0x36d   : > { %p1299_p4 = pnand %p1302_p3, %p1568_p0 }
 0x36f   : > { %1434 = dma.done.wait (!%p1299_p4), %s1096_s20, 64  }
 0x370   : > { %1436 = vsyncadd (!%p1299_p4), %s1096_s20, 4294967232  ;;  %s27_s14 = sadd.s32 1, %s1459_s14   ;;  %s1774_s10 = smov %s1443_s11 }
 0x371   : > { %p24_p5 = scmp.ge.s32.totalorder %s27_s14, 10   ;;  %s1775_s11 = smov %s1447_s0 }
 0x372   : > { %s1776_s0 = smov %s1566_s21  ;;  %s1777_s12 = smov %s1455_s13 }
 0x373   : > { %s1778_s13 = smov %s1780_s17  ;;  %26 = sbr.rel (!%p24_p5) target bundleno = 19 (0x13), region = 148 }
 0x37a   :  { %1101 = vsyncpa [#allocation8], 1 }
 0x37b   :  { %1103 = vsyncpa [#allocation8 + $0x1], 1 }

</bundles_post_ra>
